<compile_context>
chip_gen: v7x
topology: tpu7x:2x2x1
jax: 0.10.0
libtpu: 0.0.40
codegen_flags: <defaults>
</compile_context>

<pallas_src>
import functools
import math

import jax
import jax.numpy as jnp
from jax import lax
from jax.experimental import pallas as pl
from jax.experimental.pallas import tpu as pltpu


def _cdiv(a: int, b: int) -> int:
    return -(-a // b)


def _round_up(a: int, b: int) -> int:
    return _cdiv(a, b) * b


def _round_down(a: int, b: int) -> int:
    return (a // b) * b


# -----------------------------------------------------------------------------
# Fast path: table resident in VMEM, gather = one-hot MXU matmul.
# -----------------------------------------------------------------------------
_ONEHOT_MAX_VOCAB = 1024
_RESIDENT_TABLE_MAX_BYTES = 8 * 1024 * 1024   # 2x table (double buffer) budget


def _onehot_gather_kernel(ids_ref, table_ref, out_ref, *, scale):
    """ids_ref: (1,1,T) int32; table_ref: (V,D) resident; out_ref: (T,D)."""
    V, _ = table_ref.shape
    T = out_ref.shape[0]
    ids = jnp.clip(ids_ref[0], 0, V - 1)                      # (1, T)
    # onehot[v, t] = (v == ids[t]); built in (V, T) orientation so no
    # lane<->sublane relayout of the id vector is needed.
    onehot = lax.broadcasted_iota(jnp.int32, (V, T), 0) == ids
    rows = lax.dot_general(                                   # (T, D) f32
        onehot.astype(jnp.float32),
        table_ref[...].astype(jnp.float32),
        dimension_numbers=(((0,), (0,)), ((), ())),
        precision=lax.Precision.HIGHEST,
        preferred_element_type=jnp.float32,
    )
    out_ref[...] = (rows * scale).astype(out_ref.dtype)


def _embeddings_resident(ids, table, scale, n_tokens):
    V, D = table.shape
    itemsize = jnp.dtype(table.dtype).itemsize
    # T: multiple of 8; small enough that short inputs still give >= 2 grid
    # steps (keeps both v7x TensorCores busy on the "parallel" axis).
    T = max(8, min(256,
                   _round_up(_cdiv(n_tokens, 2), 8),
                   _round_up(n_tokens, 8)))
    n_pad = _round_up(n_tokens, T)
    if n_pad != n_tokens:
        ids = jnp.concatenate([ids, jnp.zeros((n_pad - n_tokens,), jnp.int32)])
    num_blocks = n_pad // T
    ids3d = ids.reshape(num_blocks, 1, T)

    vmem_limit = int(min(max(2 * V * D * itemsize + 4 * T * D * itemsize
                             + (4 << 20), 16 << 20), 32 << 20))

    out = pl.pallas_call(
        functools.partial(_onehot_gather_kernel, scale=scale),
        out_shape=jax.ShapeDtypeStruct((n_pad, D), table.dtype),
        grid=(num_blocks,),
        in_specs=[
            pl.BlockSpec((1, 1, T), lambda b: (b, 0, 0)),   # this block's ids
            pl.BlockSpec((V, D), lambda b: (0, 0)),         # table: resident
        ],
        out_specs=pl.BlockSpec((T, D), lambda b: (b, 0)),
        compiler_params=pltpu.CompilerParams(
            dimension_semantics=("parallel",),
            vmem_limit_bytes=vmem_limit),
        cost_estimate=pl.CostEstimate(
            flops=2 * n_pad * V * D,
            transcendentals=0,
            bytes_accessed=(n_pad + V) * D * itemsize + n_pad * 4),
    )(ids3d, table)
    return out


# -----------------------------------------------------------------------------
# General path: table in HBM, double-buffered per-row DMA gather.
# -----------------------------------------------------------------------------
_TARGET_BLOCK_BYTES = 512 * 1024
_MAX_BLOCK_BYTES = 2 * 1024 * 1024


def _hbm_gather_kernel(ids_ref, table_hbm, out_ref, rows_vmem, sems, *,
                       scale, inner_n):
    """Double-buffered gather of T table rows per grid step."""
    o = pl.program_id(0)          # "parallel" outer split (v7x megacore)
    i = pl.program_id(1)          # "arbitrary" inner axis (carries pipeline)
    T, _ = out_ref.shape
    V = table_hbm.shape[0]
    flat = o * inner_n + i        # flat block index handled by this step
    cur = i % 2                   # double-buffer slot holding block `flat`

    def row_copy(blk, t, slot):
        # Clamp so a bad id can't become an OOB HBM DMA (nn.Embedding raises).
        row = jnp.clip(ids_ref[blk * T + t], 0, V - 1)
        return pltpu.make_async_copy(
            table_hbm.at[pl.ds(row, 1), :],
            rows_vmem.at[slot, pl.ds(t, 1), :],
            sems.at[slot])

    def issue_block(blk, slot):
        def body(t, carry):
            row_copy(blk, t, slot).start()
            return carry
        lax.fori_loop(0, T, body, 0, unroll=8)

    def wait_block(blk, slot):
        def body(t, carry):
            # Same descriptor as the start -> same wait amount; no dummy refs.
            row_copy(blk, t, slot).wait()
            return carry
        lax.fori_loop(0, T, body, 0, unroll=8)

    @pl.when(i == 0)
    def _prime():                 # pipeline prologue (once per outer index)
        issue_block(flat, cur)    # cur == 0 here

    @pl.when(i + 1 < inner_n)
    def _prefetch_next():         # overlap next block's gather with this step
        issue_block(flat + 1, 1 - cur)

    wait_block(flat, cur)

    vals = rows_vmem[cur]
    # Scale in the table's native dtype (bf16 stays bf16 on v6e/v7x).
    out_ref[...] = (vals * jnp.asarray(scale, vals.dtype)).astype(out_ref.dtype)


def _embeddings_hbm_gather(ids, table, scale, n_tokens):
    V, D = table.shape
    itemsize = jnp.dtype(table.dtype).itemsize
    row_bytes = D * itemsize

    # Rows per block: big enough to amortize per-step overhead and keep many
    # row DMAs in flight (target ~512 KiB), small enough that 2 gather buffers
    # + 2 pipelined output buffers stay far below every generation's VMEM
    # budget (v7x: 64 MiB physical / 32 MiB scoped default).
    T = max(8, min(_round_down(max(_TARGET_BLOCK_BYTES // row_bytes, 8), 8),
                   512))
    T = min(T, max(8, _round_down(_MAX_BLOCK_BYTES // row_bytes, 8)))
    # Enough blocks for both v7x TensorCores *and* cross-step overlap.
    T = min(T, max(8, _round_up(_cdiv(n_tokens, 4), 8)))
    T = min(T, _round_up(n_tokens, 8))

    num_blocks = _cdiv(n_tokens, T)
    outer = 2 if num_blocks >= 2 else 1
    inner_n = _cdiv(num_blocks, outer)
    n_pad = outer * inner_n * T
    if n_pad != n_tokens:
        ids = jnp.concatenate([ids, jnp.zeros((n_pad - n_tokens,), jnp.int32)])

    block_bytes = T * D * itemsize
    vmem_limit = int(min(max(4 * block_bytes + (4 << 20), 16 << 20), 32 << 20))

    out = pl.pallas_call(
        functools.partial(_hbm_gather_kernel, scale=scale, inner_n=inner_n),
        out_shape=jax.ShapeDtypeStruct((n_pad, D), table.dtype),
        grid_spec=pltpu.PrefetchScalarGridSpec(
            num_scalar_prefetch=1,                         # flat ids -> SMEM
            grid=(outer, inner_n),
            in_specs=[pl.BlockSpec(memory_space=pl.ANY)],  # table stays in HBM
            out_specs=pl.BlockSpec(
                (T, D), lambda o, i, _ids: (o * inner_n + i, 0)),
            scratch_shapes=[
                pltpu.VMEM((2, T, D), table.dtype),    # double-buffered rows
                pltpu.SemaphoreType.DMA((2,)),         # one DMA sem per slot
            ]),
        compiler_params=pltpu.CompilerParams(
            dimension_semantics=("parallel", "arbitrary"),
            vmem_limit_bytes=vmem_limit),
        cost_estimate=pl.CostEstimate(
            flops=0,
            transcendentals=0,
            bytes_accessed=2 * n_pad * D * itemsize + n_pad * 4),
    )(ids, table)
    return out


# -----------------------------------------------------------------------------
# Public wrapper: Embeddings.forward equivalent.
# -----------------------------------------------------------------------------
def embeddings_forward(x, table, *, d_model=None, force_hbm_gather=False):
    """Pallas equivalent of Embeddings.forward: lut(x) * sqrt(d_model).

    x:     integer token ids, any shape.
    table: (V, D) pretrained embedding table.
    Returns x.shape + (D,) in table.dtype.
    """
    V, D = table.shape
    if d_model is None:
        d_model = D
    scale = float(math.sqrt(d_model))

    orig_shape = x.shape
    n_tokens = math.prod(orig_shape)
    ids = x.reshape(-1).astype(jnp.int32)

    itemsize = jnp.dtype(table.dtype).itemsize
    use_resident = (
        not force_hbm_gather
        and V <= _ONEHOT_MAX_VOCAB
        and 2 * V * D * itemsize <= _RESIDENT_TABLE_MAX_BYTES
    )
    if use_resident:
        out = _embeddings_resident(ids, table, scale, n_tokens)
    else:
        out = _embeddings_hbm_gather(ids, table, scale, n_tokens)

    return out[:n_tokens].reshape(*orig_shape, D)


if __name__ == "__main__":
    key = jax.random.PRNGKey(0)
    k_tab, k_idx, k_tab2, k_idx2 = jax.random.split(key, 4)

    # --- Small-vocab demo: resident-table one-hot-MXU fast path --------------
    V, D, B, S = 64, 128, 2, 8
    pretrained_embeddings = jax.random.normal(k_tab, (V, D), dtype=jnp.float32)
    x = jax.random.randint(k_idx, (B, S), 0, V, dtype=jnp.int32)

    out = jax.block_until_ready(embeddings_forward(x, pretrained_embeddings))
    ref = pretrained_embeddings[x] * math.sqrt(D)
    assert out.shape == (B, S, D)
    # Tolerance covers MXU f32 multi-pass rounding in the one-hot gather.
    assert jnp.allclose(out, ref, atol=5e-3, rtol=5e-3), "fast path mismatch"

    # --- Larger-vocab demo: HBM table + double-buffered per-row DMA gather ---
    V2, D2, B2, S2 = 512, 256, 4, 64
    table2 = jax.random.normal(k_tab2, (V2, D2), dtype=jnp.float32)
    x2 = jax.random.randint(k_idx2, (B2, S2), 0, V2, dtype=jnp.int32)

    out2 = jax.block_until_ready(
        embeddings_forward(x2, table2, force_hbm_gather=True))
    ref2 = table2[x2] * math.sqrt(D2)
    assert out2.shape == (B2, S2, D2)
    assert jnp.allclose(out2, ref2, atol=1e-5, rtol=1e-5), "gather path mismatch"

    print("KERNEL_OK")
</pallas_src>

<mosaic_0001>
module attributes {stable_mosaic.version = 11 : i64} {
  func.func @_onehot_gather_kernel(%arg0: i32, %arg1: memref<1x1x8xi32, #tpu.memory_space<vmem>>, %arg2: memref<64x128xf32, #tpu.memory_space<vmem>>, %arg3: memref<8x128xf32, #tpu.memory_space<vmem>>) attributes {dimension_semantics = [#tpu.dimension_semantics<parallel>], iteration_bounds = array<i64: 2>, scalar_prefetch = 0 : i64, scratch_operands = 0 : i64, tpu.core_type = #tpu.core_type<tc>, window_params = [{transform_indices = @transform_0, window_bounds = array<i64: 1, 1, 8>}, {pipeline_mode = #tpu.pipeline_mode<synchronous>, transform_indices = @transform_1, window_bounds = array<i64: 64, 128>}, {transform_indices = @transform_2, window_bounds = array<i64: 8, 128>}]} {
    %c0 = arith.constant 0 : index
    %c0_0 = arith.constant 0 : index
    %c0_1 = arith.constant 0 : index
    %0 = vector.load %arg1[%c0, %c0_0, %c0_1] : memref<1x1x8xi32, #tpu.memory_space<vmem>>, vector<1x1x8xi32>
    %1 = vector.shape_cast %0 : vector<1x1x8xi32> to vector<1x8xi32>
    %c0_i32 = arith.constant 0 : i32
    %c63_i32 = arith.constant 63 : i32
    %2 = vector.broadcast %c0_i32 : i32 to vector<1x8xi32>
    %3 = arith.maxsi %2, %1 : vector<1x8xi32>
    %4 = vector.broadcast %c63_i32 : i32 to vector<1x8xi32>
    %5 = arith.minsi %4, %3 : vector<1x8xi32>
    %6 = tpu.iota {dimensions = array<i32: 0>} : vector<64x8xi32>
    %7 = vector.broadcast %5 : vector<1x8xi32> to vector<64x8xi32>
    %8 = arith.cmpi eq, %6, %7 : vector<64x8xi32>
    %9 = arith.extui %8 : vector<64x8xi1> to vector<64x8xi32>
    %10 = arith.sitofp %9 : vector<64x8xi32> to vector<64x8xf32>
    %c0_2 = arith.constant 0 : index
    %c0_3 = arith.constant 0 : index
    %11 = vector.load %arg2[%c0_2, %c0_3] : memref<64x128xf32, #tpu.memory_space<vmem>>, vector<64x128xf32>
    %cst = arith.constant dense<0.000000e+00> : vector<8x128xf32>
    %12 = tpu.matmul %10, %11, %cst {dimension_numbers = #tpu.dot_dimension_numbers<[0], [0], [1], [1], [0, 1, 1, 1], [], []>, precision = #tpu.contract_precision<fp32>} : vector<64x8xf32>, vector<64x128xf32>, vector<8x128xf32> -> vector<8x128xf32>
    %cst_4 = arith.constant 11.3137083 : f32
    %13 = vector.broadcast %cst_4 : f32 to vector<8x128xf32>
    %14 = arith.mulf %12, %13 : vector<8x128xf32>
    %c0_5 = arith.constant 0 : index
    %c0_6 = arith.constant 0 : index
    %15 = vector.load %arg3[%c0_5, %c0_6] : memref<8x128xf32, #tpu.memory_space<vmem>>, vector<8x128xf32>
    tpu.vector_store %arg3[%c0_5, %c0_6], %14 {strides = array<i32>} : memref<8x128xf32, #tpu.memory_space<vmem>>, vector<8x128xf32>,
    return
  }
  func.func @transform_0(%arg0: i32) -> (i32, i32, i32) {
    %c0_i32 = arith.constant 0 : i32
    %c0_i32_0 = arith.constant 0 : i32
    %c0_i32_1 = arith.constant 0 : i32
    return %arg0, %c0_i32, %c0_i32_0 : i32, i32, i32
  }
  func.func @transform_1(%arg0: i32) -> (i32, i32) {
    %c0_i32 = arith.constant 0 : i32
    %c0_i32_0 = arith.constant 0 : i32
    %c0_i32_1 = arith.constant 0 : i32
    return %c0_i32, %c0_i32_0 : i32, i32
  }
  func.func @transform_2(%arg0: i32) -> (i32, i32) {
    %c0_i32 = arith.constant 0 : i32
    %c0_i32_0 = arith.constant 0 : i32
    return %arg0, %c0_i32 : i32, i32
  }
}

</mosaic_0001>

<bundles_post_ra>
// kernel: tpu_custom_call.1
= control target key start
LH: loop header
LB: loop body
LE: loop exit
PB: predicated region body
PF: predicated region fallthrough
CT: control target
= control target key end

     0   :  { %7 = vsyncpa [#allocation3], 0  ;;  %s1698_s0 = inlined_call_operand.hbm [shape: s32[2,1,8], index: 0, kind: input, shape index: {}]   ;;  %s1699_s1 = inlined_call_operand.hbm [shape: f32[64,128], index: 1, kind: input, shape index: {}]   ;;  %s1700_s2 = inlined_call_operand.hbm [shape: f32[16,128], index: 2, kind: output, shape index: {}]  }
   0x1   :  { %9 = vsyncpa [#allocation3 + $0x1], 0 }
   0x2   :  { %10 = vsyncpa [#allocation6], 0 }
   0x3   :  { %11 = vsyncpa [#allocation4], 0 }
   0x4   :  { %13 = vsyncpa [#allocation4 + $0x1], 0  ;;  %s1371_s9 = smov 0   ;;  %s1373_s10 = smov 0  }
   0x5   :  { %s1375_s11 = smov 0   ;;  %s1377_s12 = smov 0  }
   0x6 LB: > { %s1392_s13 = sadd.s32 4294967295, %s1346_s12   ;;  %s887_s14 = sadd.s32 4294967294, %s1346_s12   ;;  %s1346_s12 = sphi %s1377_s12, %s1720_s12   ;;  %s1342_s11 = sphi %s1375_s11, %s1719_s11   ;;  %s1338_s10 = sphi %s1373_s10, %s1718_s10   ;;  %s1334_s9 = sphi %s1371_s9, %s1717_s9  }
   0x7   : > { %p39_p0 = scmp.ne.s32.totalorder %s1338_s10, %s1334_s9  ;;  %p1701_p1 = scmp.eq.s32.totalorder %s1392_s13, 0 }
   0x8   : > { %p90_p3 = scmp.eq.s32.totalorder %s887_s14, 1  ;;  %p888_p5 = scmp.ge.s32.totalorder %s1346_s12, 1 }
   0x9   : > { %p1401_p4 = por %p1701_p1, %p39_p0  ;;  %p97_p7 = scmp.lt.s32.totalorder %s1346_s12, 3 }
   0xa   : > { %p1406_p6 = por %p90_p3, %p39_p0  ;;  %s1348_s18 = smov [#allocation5]  }
   0xb   : > { %s1704_s15 = scalar_select %p1401_p4, 1, 0 }
   0xc   : > { %s1705_s16 = scalar_select %p1406_p6, 1, 0 }
   0xd   : > { %p1411_p8 = pnand %p888_p5, %p97_p7  ;;  %s109_s19 = sshll.u32 %s1348_s18, 4  ;;  %s1415_s19 = int_to_ptr.vmem [resolvable:$true] %s109_s19 }
   0xe   : > { %s1427_s21 = sadd.s32 1, %s1346_s12   ;;  %s26_s22 = sadd.s32 1, %s1342_s11 }
   0xf   : > { %s1706_s17 = scalar_select %p1411_p8, 1, 0 }
  0x10   : > { %p1164_p9 = pneg %p1411_p8  ;;  %s23_s23 = ssub.s32 %s1346_s12, %s1427_s21 }
  0x11   : > { %s1218_s26 = scalar_lea.hbm %s1699_s1, 1024 }
  0x12   : > { %p1422_p11 = pnand %p1164_p9, %p1701_p1  ;;  %p1219_p12 = scmp.ne.s32.totalorder %s1699_s1, %s1218_s26 }
  0x13   : > { %p1225_p5 = scmp.lt.u32.totalorder %s1218_s26, %s1699_s1 }
  0x14   : > { %p1220_p13 = pneg %p1422_p11 }
  0x16   : > { %p1221_p0 = pnand %p1220_p13, %p1219_p12 }
  0x18   : > { %p1222_p3 = pneg %p1221_p0 }
  0x1a   : > { %p1227_p7 = pnand %p1225_p5, %p1222_p3 }
  0x1c   : > { %1230 = shalt.err (!%p1227_p7)
}
  0x1d   : > { %s1231_s3 = scalar_lea.vmem %s1415_s19, 1024  ;;  %p1239_p2 = scmp.lt.s32.totalorder %s1415_s19, %s1415_s19 }
  0x1e   : > { %p1232_p9 = scmp.ne.s32.totalorder %s1415_s19, %s1231_s3  ;;  %p1240_p6 = scmp.lt.s32.totalorder %s1231_s3, %s1231_s3 }
  0x20   : > { %p1234_p10 = pnand %p1232_p9, %p1220_p13  ;;  %p1241_p4 = por %p1240_p6, %p1239_p2 }
  0x22   : > { %p1235_p1 = pneg %p1234_p10 }
  0x24   : > { %p1242_p8 = pnand %p1241_p4, %p1235_p1 }
  0x26   : > { %1245 = shalt.err (!%p1242_p8)
}
  0x27   : > { %s1349_s4 = smov 128   ;;  %s1350_s5 = smov 8  }
  0x28   : > { %1167 = dma.hbm_to_vmem [thread:$0]  (!%p1422_p11), %s1699_s1, 1024, %s1415_s19, [#allocation6], %s1349_s4, %s1349_s4, %s1350_s5  }
  0x29   : > { %p24_p2 = scmp.eq.s32.totalorder %s23_s23, 0  ;;  %p33_p1 = scmp.ne.s32.totalorder %s1342_s11, %s1338_s10 }
  0x2a   : > { %p34_p4 = scmp.eq.s32.totalorder %s1346_s12, 0  ;;  %p1177_p6 = scmp.lt.s32.totalorder %s1346_s12, 2 }
  0x2b   : > { %s1458_s8 = scalar_select %p24_p2, %s1342_s11, %s26_s22  }
  0x2c   : > { %p35_p8 = por %p34_p4, %p33_p1  ;;  %p1708_p10 = scmp.eq.s32.totalorder %s1392_s13, 1 }
  0x2d   : > { %s123_s18 = sand.u32 1, %s1342_s11   ;;  %s891_s24 = sshll.u32 %s1346_s12, 4 }
  0x2e   : > { %p1462_p12 = por %p1708_p10, %p33_p1  ;;  %s1471_s26 = scalar_lea.hbm %s1698_s0, %s891_s24 }
  0x2f   : > { %s126_s19 = scalar_lea.vmem [#allocation2], %s123_s18  ;;  %p1475_p11 = pnand %p1177_p6, %p35_p8 }
  0x30   : > { %s133_s22 = sshll.u32 %s126_s19, 4  ;;  %s124_s27 = scalar_lea.sflag [#allocation3], %s123_s18  ;;  %s1473_s22 = int_to_ptr.vmem [resolvable:$true] %s133_s22 }
  0x31   : > { %s1246_s28 = scalar_lea.hbm %s1471_s26, 16  ;;  %p1248_p0 = pneg %p1475_p11 }
  0x32   : > { %p1247_p13 = scmp.ne.s32.totalorder %s1471_s26, %s1246_s28  ;;  %s1251_s3 = scalar_lea.hbm %s1698_s0, 32 }
  0x33   : > { %p1252_p7 = scmp.lt.u32.totalorder %s1471_s26, %s1698_s0  ;;  %p1253_p9 = scmp.lt.u32.totalorder %s1251_s3, %s1246_s28 }
  0x34   : > { %p1249_p3 = pnand %p1248_p0, %p1247_p13  ;;  %p1255_p1 = scmp.lt.u32.totalorder %s1246_s28, %s1471_s26 }
  0x35   : > { %p1254_p2 = por %p1253_p9, %p1252_p7 }
  0x36   : > { %p1250_p5 = pneg %p1249_p3 }
  0x37   : > { %p1256_p4 = por %p1255_p1, %p1254_p2 }
  0x39   : > { %p1257_p6 = pnand %p1256_p4, %p1250_p5 }
  0x3b   : > { %1260 = shalt.err (!%p1257_p6)
}
  0x3c   : > { %s1261_s6 = scalar_lea.vmem %s1473_s22, 16  ;;  %s1351_s7 = smov [#allocation2]  }
  0x3d   : > { %p1262_p8 = scmp.ne.s32.totalorder %s1473_s22, %s1261_s6  ;;  %s1266_s18 = sshll.u32 %s1351_s7, 4  ;;  %s1267_s18 = int_to_ptr.vmem [resolvable:$false] %s1266_s18 }
  0x3e   : > { %s1268_s24 = scalar_lea.vmem %s1267_s18, 32  ;;  %p1269_p3 = scmp.lt.s32.totalorder %s1473_s22, %s1267_s18 }
  0x3f   : > { %p1264_p10 = pnand %p1262_p8, %p1248_p0  ;;  %p1270_p7 = scmp.lt.s32.totalorder %s1268_s24, %s1261_s6 }
  0x41   : > { %p1265_p13 = pneg %p1264_p10  ;;  %p1271_p9 = por %p1270_p7, %p1269_p3 }
  0x43   : > { %p1272_p2 = pnand %p1271_p9, %p1265_p13 }
  0x45   : > { %1275 = shalt.err (!%p1272_p2)
}
  0x46   : > { %1171 = dma.hbm_to_vmem [thread:$0]  (!%p1475_p11), %s1471_s26, 16, %s1473_s22, %s124_s27  }
  0x47   : > { %p1711_p5 = scmp.ne.s32.totalorder %s1706_s17, 0 }
  0x48   : > { %s1507_s25 = sand.u32 (!%p1711_p5), 1, %s1338_s10   ;;  %p1712_p0 = scmp.ne.s32.totalorder (!%p1711_p5), %s1704_s15, 0 }
  0x49   : > { %142 = sbr.rel (%p1711_p5) target bundleno = 496 (0x1f0), region = 28  ;;  %s145_s20 = scalar_lea.sflag (!%p1711_p5), [#allocation3], %s1507_s25 }
  0x4a   : > { %s147_s19 = scalar_lea.vmem (!%p1711_p5), [#allocation2], %s1507_s25 }
  0x50   : > { %1321 = dma.done.wait (%p1712_p0), %s145_s20, 16  }
  0x51   : > { %1323 = vsyncadd (%p1712_p0), %s145_s20, 4294967280  ;;  %p1713_p1 = scmp.eq.s32.totalorder %s1392_s13, 0 }
  0x53   : > { %1325 = dma.done.wait (%p1713_p1), [#allocation6], 1024   ;;  %p1714_p11 = pmov %p1713_p1 }
  0x54   : > { %v176_v0 = vlaneseq  ;;  %v1352_v1 = vmov 0.0|0.0   ;;  %v171_v3 = vld [vmem:[%s147_s19] sm:$0x1]  ;;  %v213_v6 = vld [vmem:[#allocation5] sm:$0xff]  ;;  %v214_v7 = vld [vmem:[#allocation5 + $0x8] sm:$0xff]  ;;  %v1353_v29 = vmov 0.0  }
  0x55   : > { %1327 = vsyncadd (%p1714_p11), [#allocation6], 4294966272  ;;  %1111 = vmatprep.subr.bf16.mxu0 %v1352_v1  ;;  %1075 = vmatprep.subr.bf16.mxu1 %v1352_v1  ;;  %vm172_vm0 = vcmp.gt.s32.totalorder %v171_v3, 0  ;;  %v258_v8 = vand.u32 4294901760, %v213_v6  ;;  %v261_v9 = vand.u32 4294901760, %v214_v7  ;;  %v215_v10 = vld [vmem:[#allocation5 + $0x10] sm:$0xff] }
  0x56   : > { %v1521_v2 = vshrl.u32 %v176_v0, 7  ;;  %v216_v11 = vld [vmem:[#allocation5 + $0x18] sm:$0xff]  ;;  %v217_v12 = vld [vmem:[#allocation5 + $0x20] sm:$0xff]  ;;  %v173_v13 = vsel %vm172_vm0, %v171_v3, 0  ;;  %v264_v14 = vand.u32 4294901760, %v215_v10  ;;  %v218_v23 = vld [vmem:[#allocation5 + $0x28] sm:$0xff] }
  0x57   : > { %v267_v15 = vand.u32 4294901760, %v216_v11  ;;  %v270_v16 = vand.u32 4294901760, %v217_v12  ;;  %vm174_vm1 = vcmp.lt.s32.totalorder %v173_v13, 63  ;;  %v1525_v17 = vpack.c.bf16 %v261_v9, %v258_v8  ;;  %v219_v31 = vld [vmem:[#allocation5 + $0x30] sm:$0xff]  ;;  %v220_v32 = vld [vmem:[#allocation5 + $0x38] sm:$0xff]  ;;  %s894_s15 = sshll.u32 %s1507_s25, 3 }
  0x58   : > { %v187_v4 = vsub.s32 0, %v1521_v2  ;;  %v178_v5 = vadd.s32 8, %v1521_v2  ;;  %v1527_v18 = vsub.f32 %v213_v6, %v258_v8  ;;  %v1529_v19 = vsub.f32 %v214_v7, %v261_v9  ;;  %s904_s17 = sshll.u32 %s1392_s13, 7  ;;  %s170_s26 = scalar_lea.vmem [#allocation7], %s894_s15 }
  0x59   : > { %v175_v20 = vsel %vm174_vm1, %v173_v13, 63  ;;  %v1531_v21 = vsub.f32 %v215_v10, %v264_v14  ;;  %v1533_v22 = vsub.f32 %v216_v11, %v267_v15  ;;  %1113 = vmatpush3.bf16.msra.mxu0 %v1525_v17  ;;  %1077 = vmatpush3.bf16.msra.mxu1 %v1525_v17  ;;  %v1539_v25 = vsub.f32 %v217_v12, %v270_v16  ;;  %s810_s22 = sshll.u32 %s170_s26, 4  ;;  %s1654_s28 = scalar_lea.hbm %s1700_s2, %s904_s17  ;;  %s1656_s22 = int_to_ptr.vmem [resolvable:$true] %s810_s22 }
  0x5a   : > { %v1535_v24 = vrot.slane %v175_v20, %v187_v4  ;;  %v179_v26 = vadd.s32 16, %v1521_v2  ;;  %1114 = vmatprep.subr.bf16.mxu0 %v1352_v1  ;;  %v1543_v27 = vpack.c.bf16 %v267_v15, %v264_v14  ;;  %1078 = vmatprep.subr.bf16.mxu1 %v1352_v1  ;;  %v273_v28 = vand.u32 4294901760, %v218_v23  ;;  %s797_s29 = scalar_lea.sflag [#allocation4], %s1507_s25  ;;  %s1276_s30 = scalar_lea.vmem %s1656_s22, 128 }
  0x5b   : > { %v180_v33 = vadd.s32 24, %v1521_v2  ;;  %v276_v37 = vand.u32 4294901760, %v219_v31  ;;  %v279_v38 = vand.u32 4294901760, %v220_v32  ;;  %v181_v39 = vadd.s32 32, %v1521_v2  ;;  %p1277_p4 = scmp.ne.s32.totalorder %s1656_s22, %s1276_s30  ;;  %s1355_s13 = smov [#allocation7]  }
  0x5c   : > { %vm189_vm2 = vcmp.eq.s32.totalorder %v1521_v2, %v1535_v24  ;;  %vm190_vm3 = vcmp.eq.s32.totalorder %v178_v5, %v1535_v24  ;;  %vm191_vm4 = vcmp.eq.s32.totalorder %v179_v26, %v1535_v24  ;;  %v1556_v35 = vpack.c.bf16 %v273_v28, %v270_v16  ;;  %s1280_s3 = sshll.u32 %s1355_s13, 4  ;;  %s1281_s3 = int_to_ptr.vmem [resolvable:$false] %s1280_s3 }
  0x5d   : > { %v895_v30 = vsel %vm189_vm2, 1.0, %v1353_v29  ;;  %v896_v34 = vsel %vm190_vm3, 1.0, %v1353_v29  ;;  %1116 = vmatpush3.bf16.msra.mxu0 %v1543_v27  ;;  %1080 = vmatpush3.bf16.msra.mxu1 %v1543_v27  ;;  %v1558_v36 = vsub.f32 %v218_v23, %v273_v28  ;;  %vm192_vm5 = vcmp.eq.s32.totalorder %v180_v33, %v1535_v24  ;;  %p1278_p6 = pnand %p1277_p4, %p1462_p12  ;;  %s1282_s4 = scalar_lea.vmem %s1281_s3, 256 }
  0x5e   : > { %221 = vxpose.xlu0.b32.start [1/8] (short) (narrow) %v895_v30, 8  ;;  %1117 = vmatprep.subr.bf16.mxu0 %v1352_v1  ;;  %v1563_v40 = vsub.f32 %v219_v31, %v276_v37  ;;  %v1565_v41 = vsub.f32 %v220_v32, %v279_v38  ;;  %v897_v42 = vsel %vm191_vm4, 1.0, %v1353_v29  ;;  %v1570_v43 = vpack.c.bf16 %v279_v38, %v276_v37  ;;  %p1283_p10 = scmp.lt.s32.totalorder %s1656_s22, %s1281_s3  ;;  %p1284_p13 = scmp.lt.s32.totalorder %s1282_s4, %s1276_s30 }
  0x5f   : > { %1081 = vmatprep.subr.bf16.mxu1 %v1352_v1  ;;  %v343_v44 = vand.u32 4294901760, %v1527_v18  ;;  %v350_v45 = vand.u32 4294901760, %v1529_v19  ;;  %vm1354_vm6 = vmmov 0   ;;  %v898_v49 = vsel %vm192_vm5, 1.0, %v1353_v29  ;;  %p1279_p8 = pneg %p1278_p6 }
  0x60   : > { %1034 = vmatprep.mubr.msk.f32.mxu0 %vm1354_vm6, %v1353_v29  ;;  %977 = vmatprep.mubr.msk.f32.mxu1 %vm1354_vm6, %v1353_v29  ;;  %vm193_vm7 = vcmp.eq.s32.totalorder %v181_v39, %v1535_v24  ;;  %v182_v50 = vadd.s32 40, %v1521_v2  ;;  %v357_v53 = vand.u32 4294901760, %v1531_v21  ;;  %v364_v54 = vand.u32 4294901760, %v1533_v22  ;;  %p1285_p3 = por %p1284_p13, %p1283_p10 }
  0x61   : > { %1119 = vmatpush3.bf16.msra.mxu0 %v1556_v35  ;;  %1083 = vmatpush3.bf16.msra.mxu1 %v1556_v35  ;;  %v1578_v46 = vpack.c.bf16 %v350_v45, %v343_v44  ;;  %v344_v47 = vsub.f32 %v1527_v18, %v343_v44  ;;  %v351_v48 = vsub.f32 %v1529_v19, %v350_v45  ;;  %v899_v59 = vsel %vm193_vm7, 1.0, %v1353_v29 }
  0x62   : > { %222 = vxpose.xlu0.b32.cont [2/8] (short) (narrow) %v896_v34, 8  ;;  %1120 = vmatprep.subr.bf16.mxu0 %v1352_v1  ;;  %v1127_v56 = vpack.c.bf16 %v364_v54, %v357_v53  ;;  %v358_v57 = vsub.f32 %v1531_v21, %v357_v53  ;;  %v365_v58 = vsub.f32 %v1533_v22, %v364_v54  ;;  %v371_v62 = vand.u32 4294901760, %v1539_v25  ;;  %p1286_p7 = pnand %p1285_p3, %p1279_p8 }
  0x63   : > { %1084 = vmatprep.subr.bf16.mxu1 %v1352_v1  ;;  %v345_v51 = vand.u32 4294901760, %v344_v47  ;;  %v352_v52 = vand.u32 4294901760, %v351_v48  ;;  %vm194_vm8 = vcmp.eq.s32.totalorder %v182_v50, %v1535_v24  ;;  %v378_v63 = vand.u32 4294901760, %v1558_v36 }
  0x64   : > { %v359_v60 = vand.u32 4294901760, %v358_v57  ;;  %v366_v61 = vand.u32 4294901760, %v365_v58  ;;  %v183_v0 = vadd.s32 48, %v1521_v2  ;;  %v372_v5 = vsub.f32 %v1539_v25, %v371_v62 }
  0x65   : > { %1122 = vmatpush3.bf16.msra.mxu0 %v1570_v43  ;;  %1086 = vmatpush3.bf16.msra.mxu1 %v1570_v43  ;;  %v1088_v55 = vpack.c.bf16 %v352_v52, %v345_v51  ;;  %v1130_v4 = vpack.c.bf16 %v378_v63, %v371_v62  ;;  %v379_v6 = vsub.f32 %v1558_v36, %v378_v63  ;;  %v900_v7 = vsel %vm194_vm8, 1.0, %v1353_v29 }
  0x66   : > { %223 = vxpose.xlu0.b32.cont [3/8] (short) (narrow) %v897_v42, 8  ;;  %1123 = vmatprep.subr.bf16.mxu0 %v1352_v1  ;;  %v1091_v3 = vpack.c.bf16 %v366_v61, %v359_v60  ;;  %v373_v8 = vand.u32 4294901760, %v372_v5  ;;  %v385_v10 = vand.u32 4294901760, %v1563_v40  ;;  %v392_v11 = vand.u32 4294901760, %v1565_v41 }
  0x67   : > { %1087 = vmatprep.subr.bf16.mxu1 %v1352_v1  ;;  %v380_v9 = vand.u32 4294901760, %v379_v6  ;;  %vm195_vm9 = vcmp.eq.s32.totalorder %v183_v0, %v1535_v24  ;;  %v184_v12 = vadd.s32 56, %v1521_v2  ;;  %v1100_v2 = vpack.c.bf16 %v1529_v19, %v1527_v18 }
  0x68   : > { %v1133_v14 = vpack.c.bf16 %v392_v11, %v385_v10  ;;  %v386_v15 = vsub.f32 %v1563_v40, %v385_v10  ;;  %v393_v16 = vsub.f32 %v1565_v41, %v392_v11  ;;  %v901_v20 = vsel %vm195_vm9, 1.0, %v1353_v29 }
  0x69   : > { %v1094_v13 = vpack.c.bf16 %v380_v9, %v373_v8  ;;  %vm196_vm10 = vcmp.eq.s32.totalorder %v184_v12, %v1535_v24  ;;  %v1103_v31 = vpack.c.bf16 %v1533_v22, %v1531_v21  ;;  %v1106_v32 = vpack.c.bf16 %v1558_v36, %v1539_v25 }
  0x6a   : > { %224 = vxpose.xlu0.b32.cont [4/8] (short) (narrow) %v898_v49, 8  ;;  %v387_v23 = vand.u32 4294901760, %v386_v15  ;;  %v394_v26 = vand.u32 4294901760, %v393_v16  ;;  %v902_v30 = vsel %vm196_vm10, 1.0, %v1353_v29  ;;  %v1109_v33 = vpack.c.bf16 %v1565_v41, %v1563_v40 }
  0x6b   : > { %vm253_vm11 = vcmask 523264  }
  0x6c   : > { %v1097_v28 = vpack.c.bf16 %v394_v26, %v387_v23 }
  0x6e   : > { %225 = vxpose.xlu0.b32.cont [5/8] (short) (narrow) %v899_v59, 8 }
  0x72   : > { %226 = vxpose.xlu0.b32.cont [6/8] (short) (narrow) %v900_v7, 8 }
  0x76   : > { %227 = vxpose.xlu0.b32.cont [7/8] (short) (narrow) %v901_v20, 8 }
  0x7a   : > { %228 = vxpose.xlu0.b32.end [8/8] (short) (narrow) %v902_v30, 8 }
  0xde   : > { %v237_v34 = vpop.trf.xlu0 }
  0xdf   : > { %v255_v24 = vsel %vm253_vm11, %v237_v34, 0 }
  0xe0   : > { %v330_v37 = vand.u32 4294901760, %v255_v24 }
  0xe2   : > { %v331_v38 = vsub.f32 %v255_v24, %v330_v37 }
  0xe4   : > { %v332_v39 = vand.u32 4294901760, %v331_v38 }
  0xe6   : > { %1035 = vmatmul.mubr.f32.vlgmr.msra.gmra.mrb[0].mxu0 %v332_v39  ;;  %v333_v42 = vsub.f32 %v331_v38, %v332_v39 }
  0xe7   : > { %1125 = vmatpush3.bf16.msra.mxu0 %v1578_v46  ;;  %1053 = vmatprep.mubr.msk.f32.mxu0 %vm1354_vm6, %v1353_v29 }
  0xe8   : > { %1126 = vmatprep.subr.bf16.mxu0 %v1352_v1  ;;  %v334_v18 = vand.u32 4294901760, %v333_v42 }
  0xea   : > { %978 = vmatmul.mubr.f32.vlgmr.msra.gmra.mrb[0].mxu1 %v334_v18 }
  0xeb   : > { %1089 = vmatpush3.bf16.msra.mxu1 %v1088_v55  ;;  %1128 = vmatpush3.bf16.msra.mxu0 %v1127_v56 }
  0xec   : > { %1090 = vmatprep.subr.bf16.mxu1 %v1352_v1  ;;  %1129 = vmatprep.subr.bf16.mxu0 %v1352_v1 }
  0xed   : > { %996 = vmatprep.mubr.msk.f32.mxu1 %vm1354_vm6, %v1353_v29 }
  0xef   : > { %1092 = vmatpush3.bf16.msra.mxu1 %v1091_v3  ;;  %1131 = vmatpush3.bf16.msra.mxu0 %v1130_v4 }
  0xf0   : > { %1093 = vmatprep.subr.bf16.mxu1 %v1352_v1  ;;  %1132 = vmatprep.subr.bf16.mxu0 %v1352_v1 }
  0xf3   : > { %1095 = vmatpush3.bf16.msra.mxu1 %v1094_v13  ;;  %1134 = vmatpush3.bf16.msra.mxu0 %v1133_v14 }
  0xf4   : > { %1096 = vmatprep.subr.bf16.mxu1 %v1352_v1  ;;  %1135 = vmatprep.subr.bf16.mxu0 %v1352_v1 }
  0xf6   : > { %1054 = vmatmul.mubr.f32.vlgmr.msra.gmra.mrb[0].mxu0 %v330_v37 }
  0xf7   : > { %1098 = vmatpush3.bf16.msra.mxu1 %v1097_v28  ;;  %1137 = vmatpush3.bf16.msra.mxu0 %v1525_v17 }
  0xf8   : > { %1099 = vmatprep.subr.bf16.mxu1 %v1352_v1  ;;  %1138 = vmatprep.subr.bf16.mxu0 %v1352_v1 }
  0xf9   : > { %1072 = vmatprep.mubr.msk.f32.mxu0 %vm1354_vm6, %v1353_v29 }
  0xfa   : > { %997 = vmatmul.mubr.f32.vlgmr.msra.gmra.mrb[0].mxu1 %v330_v37 }
  0xfb   : > { %1101 = vmatpush3.bf16.msra.mxu1 %v1100_v2  ;;  %1140 = vmatpush3.bf16.msra.mxu0 %v1543_v27 }
  0xfc   : > { %1102 = vmatprep.subr.bf16.mxu1 %v1352_v1  ;;  %1141 = vmatprep.subr.bf16.mxu0 %v1352_v1 }
  0xfd   : > { %1015 = vmatprep.mubr.msk.f32.mxu1 %vm1354_vm6, %v1353_v29 }
  0xff   : > { %1104 = vmatpush3.bf16.msra.mxu1 %v1103_v31  ;;  %1143 = vmatpush3.bf16.msra.mxu0 %v1556_v35 }
 0x100   : > { %1105 = vmatprep.subr.bf16.mxu1 %v1352_v1  ;;  %1144 = vmatprep.subr.bf16.mxu0 %v1352_v1 }
 0x103   : > { %1107 = vmatpush3.bf16.msra.mxu1 %v1106_v32  ;;  %1146 = vmatpush3.bf16.msra.mxu0 %v1570_v43 }
 0x104   : > { %1108 = vmatprep.subr.bf16.mxu1 %v1352_v1 }
 0x106   : > { %1073 = vmatmul.mubr.f32.vlgmr.msra.gmra.mrb[0].mxu0 %v330_v37 }
 0x107   : > { %1110 = vmatpush3.bf16.msra.mxu1 %v1109_v33 }
 0x10a   : > { %1016 = vmatmul.mubr.f32.vlgmr.msra.gmra.mrb[0].mxu1 %v331_v38 }
 0x1d9   : > { %v790_v17 = vpop.f32.mrb[0].mxu0 }
 0x1da   : > { %v1074_v19 = vpop.f32.mrb[1].mxu0 }
 0x1dd   : > { %v535_v21 = vpop.f32.mrb[0].mxu1 }
 0x1de   : > { %v1147_v22 = vadd.f32 %v790_v17, %v535_v21  ;;  %v1017_v25 = vpop.f32.mrb[1].mxu1 }
 0x1e0   : > { %v794_v27 = vmul.f32 11.313708, %v1147_v22 }
 0x1e2   : > { %795 = vst [vmem:[%s170_s26] sm:$0xff] %v794_v27 }
 0x1e3   : > { %1289 = shalt.err (!%p1286_p7)
}
 0x1e4   : > { %s1290_s5 = scalar_lea.hbm %s1654_s28, 128  ;;  %s1294_s18 = scalar_lea.hbm %s1700_s2, 256 }
 0x1e5   : > { %p1291_p9 = scmp.ne.s32.totalorder %s1654_s28, %s1290_s5  ;;  %p1295_p0 = scmp.lt.u32.totalorder %s1654_s28, %s1700_s2 }
 0x1e6   : > { %p1296_p1 = scmp.lt.u32.totalorder %s1294_s18, %s1290_s5  ;;  %p1298_p4 = scmp.lt.u32.totalorder %s1290_s5, %s1654_s28 }
 0x1e7   : > { %p1292_p2 = pnand %p1291_p9, %p1462_p12 }
 0x1e8   : > { %p1297_p11 = por %p1296_p1, %p1295_p0 }
 0x1e9   : > { %p1293_p5 = pneg %p1292_p2 }
 0x1ea   : > { %p1299_p6 = por %p1298_p4, %p1297_p11 }
 0x1ec   : > { %p1300_p8 = pnand %p1299_p6, %p1293_p5 }
 0x1ee   : > { %1303 = shalt.err (!%p1300_p8)
}
 0x1ef   : > { %1162 = dma.vmem_to_hbm [thread:$0]  (%p1462_p12), %s1656_s22, 128, %s1654_s28, %s797_s29  }
 0x1f0 PF: > { %s822_s20 = sand.u32 1, %s1334_s9   ;;  %p1715_p10 = scmp.ne.s32.totalorder %s1705_s16, 0 }
 0x1f1   : > { %p1716_p13 = scmp.ge.s32.totalorder %s1346_s12, 2  ;;  %s823_s19 = scalar_lea.sflag [#allocation4], %s822_s20 }
 0x1f3   : > { %p1173_p3 = pnand %p1716_p13, %p1715_p10 }
 0x1f5   : > { %1329 = dma.done.wait (!%p1173_p3), %s823_s19, 128  }
 0x1f6   : > { %1331 = vsyncadd (!%p1173_p3), %s823_s19, 4294967168  ;;  %p16_p7 = scmp.ge.s32.totalorder %s1427_s21, 4   ;;  %s1717_s9 = smov %s1338_s10 }
 0x1f7   : > { %s1718_s10 = smov %s1342_s11  ;;  %s1719_s11 = smov %s1458_s8 }
 0x1f8   : > { %s1720_s12 = smov %s1427_s21  ;;  %18 = sbr.rel (!%p16_p7) target bundleno = 6 (0x6), region = 77 }
 0x1ff   :  { %828 = vsyncpa [#allocation3], 1 }
 0x200   :  { %830 = vsyncpa [#allocation3 + $0x1], 1 }
 0x201   :  { %831 = vsyncpa [#allocation6], 1 }
 0x202   :  { %832 = vsyncpa [#allocation4], 1 }
 0x203   :  { %834 = vsyncpa [#allocation4 + $0x1], 1 }

</bundles_post_ra>
